<compile_context>
chip_gen: v7x
topology: tpu7x:2x2x1
jax: 0.10.0
libtpu: 0.0.40
codegen_flags: <defaults>
</compile_context>

<pallas_src>
import functools

import numpy as np
import jax
import jax.numpy as jnp
from jax import lax
from jax.experimental import pallas as pl
from jax.experimental.pallas import tpu as pltpu


LANE = 128  # TPU vreg lane width


# ----------------------------------------------------------------------------
# Pallas kernel: fused c_attn -> per-row spatial softmax attention -> c_proj.
# ----------------------------------------------------------------------------
def sp_attention_kernel(xT_ref, wqkv_ref, wproj_ref, bqkv_ref, bproj_ref, o_ref,
                        *, nfeature, lanes):
    # xT_ref   : (C, TILE_N)  activations, transposed (rows on the lane axis)
    # wqkv_ref : (3C, C)      c_attn weight (torch layout; y^T = W @ x^T)
    # wproj_ref: (C, C)       c_proj weight
    # bqkv_ref : (3C, 1)      c_attn bias;  bproj_ref: (C, 1) c_proj bias
    # o_ref    : (C, TILE_N)  output y, transposed
    C = nfeature
    tile_n = xT_ref.shape[1]
    n_slabs = tile_n // lanes

    # Tiny resident operands: load once per grid step, live in a few vregs.
    wqkv = wqkv_ref[...].astype(jnp.float32)     # (3C, C)
    wproj = wproj_ref[...].astype(jnp.float32)   # (C, C)
    bqkv = bqkv_ref[...]                         # (3C, 1)
    bproj = bproj_ref[...]                       # (C, 1)

    def slab_body(si, carry):
        n0 = pl.multiple_of(si * lanes, lanes)
        x = xT_ref[:, pl.ds(n0, lanes)].astype(jnp.float32)          # (C, lanes)

        # Fused q/k/v projection: one (3C, C) @ (C, lanes) MXU matmul.
        qkv = jnp.dot(wqkv, x, preferred_element_type=jnp.float32) + bqkv
        q = qkv[:C, :]          # (C_i, lanes)
        k = qkv[C:2 * C, :]     # (C_j, lanes)
        v = qkv[2 * C:, :]      # (C_j, lanes)

        # Scores s[j, i, n] = q[i, n] * k[j, n]. j is the leading (non-layout)
        # axis, so the softmax reductions over j are elementwise VPU max/add
        # across C vregs; i sits on sublanes, rows on lanes (fully lane-dense).
        s = k[:, None, :] * q[None, :, :]                            # (C, C, lanes)
        m = jnp.max(s, axis=0)                                       # (C, lanes)
        e = jnp.exp(s - m[None, :, :])                               # EUP
        z = jnp.sum(e, axis=0)                                       # (C, lanes)
        num = jnp.sum(e * v[:, None, :], axis=0)                     # (C, lanes)

        # Softmax denominator on the EUP; one Newton step restores ~f32 accuracy
        # at the cost of two cheap VPU ops.
        inv = pl.reciprocal(z, approx=True)
        inv = inv * (2.0 - z * inv)
        attn = num * inv                                             # (C, lanes)

        # Output projection (c_proj) and lane-dense, unmasked store.
        y = jnp.dot(wproj, attn, preferred_element_type=jnp.float32) + bproj
        o_ref[:, pl.ds(n0, lanes)] = y.astype(o_ref.dtype)
        return carry

    lax.fori_loop(0, n_slabs, slab_body, 0, unroll=min(4, n_slabs))


# ----------------------------------------------------------------------------
# Wrapper: transpose rows onto lanes, pad/tile, call pallas_call.
# ----------------------------------------------------------------------------
def sp_attention_forward(x, w_attn, b_attn, w_proj, b_proj, *,
                         tile_rows=2048, slab_lanes=256):
    """x: (B, T, C). w_attn: (3C, C) torch-Linear weight; b_attn: (3C,) or None.
       w_proj: (C, C) torch-Linear weight; b_proj: (C,) or None."""
    B, T, C = x.shape
    N = B * T
    out_dtype = x.dtype

    if b_attn is None:
        b_attn = jnp.zeros((3 * C,), jnp.float32)
    if b_proj is None:
        b_proj = jnp.zeros((C,), jnp.float32)

    # Rows live on the lane axis -> tiles are multiples of 128 rows. Cap the
    # tile so the grid has >= 2 steps whenever >= 2 lane-tiles of rows exist
    # (v7x megacore); otherwise use the largest requested tile (amortizes the
    # ~0.35us per-grid-step overhead; VMEM is not a constraint at this C).
    n_lane_tiles = pl.cdiv(N, LANE)
    tiles_per_step = max(1, min(tile_rows // LANE, pl.cdiv(n_lane_tiles, 2)))
    tile_n = tiles_per_step * LANE
    np_rows = pl.cdiv(N, tile_n) * tile_n
    num_tiles = np_rows // tile_n

    # In-kernel slab width (lane chunk per loop iteration); must divide tile_n.
    lanes = min(slab_lanes, tile_n)
    if tile_n % lanes:
        lanes = LANE

    # Lane-dense activations: rows (B*T) on the last (lane) axis. Padding rows
    # are zero -> finite junk, sliced off below.
    xT = x.reshape(N, C).T                                   # (C, N)
    if np_rows != N:
        xT = jnp.pad(xT, ((0, 0), (0, np_rows - N)))

    # torch Linear computes y = x @ W^T + b, i.e. y^T = W @ x^T + b[:, None],
    # so torch weights are used as-is (no transpose) in the transposed layout.
    wqkv = jnp.asarray(w_attn, jnp.float32)                  # (3C, C) fused q/k/v
    wproj = jnp.asarray(w_proj, jnp.float32)                 # (C, C)
    bqkv = jnp.asarray(b_attn, jnp.float32).reshape(3 * C, 1)
    bproj = jnp.asarray(b_proj, jnp.float32).reshape(C, 1)

    kernel = functools.partial(sp_attention_kernel, nfeature=C, lanes=lanes)

    def full_spec(shape):                                    # resident operands
        return pl.BlockSpec(shape, lambda i: (0, 0))

    outT = pl.pallas_call(
        kernel,
        out_shape=jax.ShapeDtypeStruct((C, np_rows), out_dtype),
        grid=(num_tiles,),
        in_specs=[
            pl.BlockSpec((C, tile_n), lambda i: (0, i)),     # xT row tile (pipelined)
            full_spec((3 * C, C)),                           # fused c_attn weight
            full_spec((C, C)),                               # c_proj weight
            full_spec((3 * C, 1)),                           # c_attn bias
            full_spec((C, 1)),                               # c_proj bias
        ],
        out_specs=pl.BlockSpec((C, tile_n), lambda i: (0, i)),
        compiler_params=pltpu.CompilerParams(
            dimension_semantics=("parallel",),               # row tiles independent
        ),
    )(xT, wqkv, wproj, bqkv, bproj)

    return outT[:, :N].T.reshape(B, T, C)


# ----------------------------------------------------------------------------
# Pure-JAX reference for validation (mirrors the torch forward, dropout = id).
# ----------------------------------------------------------------------------
def sp_attention_reference(x, w_attn, b_attn, w_proj, b_proj):
    B, T, C = x.shape
    qkv = jnp.einsum("btc,oc->bto", x, w_attn) + b_attn
    q, k, v = qkv[..., :C], qkv[..., C:2 * C], qkv[..., 2 * C:]
    w = q[..., :, None] * k[..., None, :]                    # (B, T, C, C)
    p = jax.nn.softmax(w, axis=-1)
    sp = jnp.sum(p * v[..., None, :], axis=-1)               # (B, T, C)
    return jnp.einsum("btc,oc->bto", sp, w_proj) + b_proj


if __name__ == "__main__":
    key = jax.random.PRNGKey(0)
    kx, kw1, kb1, kw2, kb2, kx2 = jax.random.split(key, 6)

    # Small config: batchsize=2, len_seq=16, nroi (nfeature)=8, is_bias=True.
    B, T, C = 2, 16, 8
    bound = 1.0 / np.sqrt(C)
    w_attn = jax.random.uniform(kw1, (3 * C, C), jnp.float32, -bound, bound)
    b_attn = jax.random.uniform(kb1, (3 * C,), jnp.float32, -bound, bound)
    w_proj = jax.random.uniform(kw2, (C, C), jnp.float32, -bound, bound)
    b_proj = jax.random.uniform(kb2, (C,), jnp.float32, -bound, bound)

    # 1) Small f32 case (matches the module's default usage).
    x = jax.random.normal(kx, (B, T, C), dtype=jnp.float32)
    out = jax.block_until_ready(sp_attention_forward(x, w_attn, b_attn, w_proj, b_proj))
    ref = sp_attention_reference(x, w_attn, b_attn, w_proj, b_proj)
    assert out.shape == (B, T, C)
    np.testing.assert_allclose(np.asarray(out), np.asarray(ref), rtol=1e-3, atol=1e-3)

    # 2) Larger ragged case: exercises the multi-tile grid, row padding and the
    #    multi-slab in-kernel loop.
    B2, T2 = 3, 200
    x2 = jax.random.normal(kx2, (B2, T2, C), dtype=jnp.float32)
    out2 = jax.block_until_ready(sp_attention_forward(x2, w_attn, b_attn, w_proj, b_proj))
    ref2 = sp_attention_reference(x2, w_attn, b_attn, w_proj, b_proj)
    np.testing.assert_allclose(np.asarray(out2), np.asarray(ref2), rtol=1e-3, atol=1e-3)

    # 3) bf16 activations: halves HBM traffic for x / y; math stays f32 in-kernel.
    xb = x.astype(jnp.bfloat16)
    outb = jax.block_until_ready(sp_attention_forward(xb, w_attn, b_attn, w_proj, b_proj))
    assert outb.dtype == jnp.bfloat16
    refb = sp_attention_reference(xb.astype(jnp.float32), w_attn, b_attn, w_proj, b_proj)
    np.testing.assert_allclose(np.asarray(outb.astype(jnp.float32)), np.asarray(refb),
                               rtol=2e-2, atol=2e-2)

    print("KERNEL_OK")
</pallas_src>

<mosaic_0001>
module attributes {stable_mosaic.version = 11 : i64} {
  func.func @sp_attention_kernel(%arg0: i32, %arg1: memref<8x128xf32, #tpu.memory_space<vmem>>, %arg2: memref<24x8xf32, #tpu.memory_space<vmem>>, %arg3: memref<8x8xf32, #tpu.memory_space<vmem>>, %arg4: memref<24x1xf32, #tpu.memory_space<vmem>>, %arg5: memref<8x1xf32, #tpu.memory_space<vmem>>, %arg6: memref<8x128xf32, #tpu.memory_space<vmem>>) attributes {dimension_semantics = [#tpu.dimension_semantics<parallel>], iteration_bounds = array<i64: 1>, scalar_prefetch = 0 : i64, scratch_operands = 0 : i64, tpu.core_type = #tpu.core_type<tc>, window_params = [{transform_indices = @transform_0, window_bounds = array<i64: 8, 128>}, {pipeline_mode = #tpu.pipeline_mode<synchronous>, transform_indices = @transform_1, window_bounds = array<i64: 24, 8>}, {pipeline_mode = #tpu.pipeline_mode<synchronous>, transform_indices = @transform_2, window_bounds = array<i64: 8, 8>}, {pipeline_mode = #tpu.pipeline_mode<synchronous>, transform_indices = @transform_3, window_bounds = array<i64: 24, 1>}, {pipeline_mode = #tpu.pipeline_mode<synchronous>, transform_indices = @transform_4, window_bounds = array<i64: 8, 1>}, {transform_indices = @transform_5, window_bounds = array<i64: 8, 128>}]} {
    %c0 = arith.constant 0 : index
    %c0_0 = arith.constant 0 : index
    %0 = vector.load %arg2[%c0, %c0_0] : memref<24x8xf32, #tpu.memory_space<vmem>>, vector<24x8xf32>
    %c0_1 = arith.constant 0 : index
    %c0_2 = arith.constant 0 : index
    %1 = vector.load %arg3[%c0_1, %c0_2] : memref<8x8xf32, #tpu.memory_space<vmem>>, vector<8x8xf32>
    %c0_3 = arith.constant 0 : index
    %c0_4 = arith.constant 0 : index
    %2 = vector.load %arg4[%c0_3, %c0_4] : memref<24x1xf32, #tpu.memory_space<vmem>>, vector<24x1xf32>
    %c0_5 = arith.constant 0 : index
    %c0_6 = arith.constant 0 : index
    %3 = vector.load %arg5[%c0_5, %c0_6] : memref<8x1xf32, #tpu.memory_space<vmem>>, vector<8x1xf32>
    %c0_i32 = arith.constant 0 : i32
    %c128_i32 = arith.constant 128 : i32
    %4 = arith.muli %c0_i32, %c128_i32 : i32
    %5 = tpu.assume_multiple %4, 128 : i32
    %c0_7 = arith.constant 0 : index
    %6 = arith.index_cast %5 : i32 to index
    %7 = vector.load %arg1[%c0_7, %6] : memref<8x128xf32, #tpu.memory_space<vmem>>, vector<8x128xf32>
    %cst = arith.constant dense<0.000000e+00> : vector<24x128xf32>
    %8 = tpu.matmul %0, %7, %cst {dimension_numbers = #tpu.dot_dimension_numbers<[1], [0], [0], [1], [0, 0, 1, 1], [], []>} : vector<24x8xf32>, vector<8x128xf32>, vector<24x128xf32> -> vector<24x128xf32>
    %9 = vector.broadcast %2 : vector<24x1xf32> to vector<24x128xf32>
    %10 = arith.addf %8, %9 : vector<24x128xf32>
    %11 = vector.extract_strided_slice %10 {offsets = [0, 0], sizes = [8, 128], strides = [1, 1]} : vector<24x128xf32> to vector<8x128xf32>
    %12 = vector.extract_strided_slice %10 {offsets = [8, 0], sizes = [8, 128], strides = [1, 1]} : vector<24x128xf32> to vector<8x128xf32>
    %13 = vector.extract_strided_slice %10 {offsets = [16, 0], sizes = [8, 128], strides = [1, 1]} : vector<24x128xf32> to vector<8x128xf32>
    %14 = vector.shape_cast %12 : vector<8x128xf32> to vector<8x1x128xf32>
    %15 = vector.shape_cast %11 : vector<8x128xf32> to vector<1x8x128xf32>
    %16 = vector.broadcast %14 : vector<8x1x128xf32> to vector<8x8x128xf32>
    %17 = vector.broadcast %15 : vector<1x8x128xf32> to vector<8x8x128xf32>
    %18 = arith.mulf %16, %17 : vector<8x8x128xf32>
    %cst_8 = arith.constant dense<0xFF800000> : vector<8x128xf32>
    %19 = vector.multi_reduction <maximumf>, %18, %cst_8 [0] : vector<8x8x128xf32> to vector<8x128xf32>
    %20 = vector.shape_cast %19 : vector<8x128xf32> to vector<1x8x128xf32>
    %21 = vector.broadcast %20 : vector<1x8x128xf32> to vector<8x8x128xf32>
    %22 = arith.subf %18, %21 : vector<8x8x128xf32>
    %23 = math.exp %22 : vector<8x8x128xf32>
    %cst_9 = arith.constant dense<0.000000e+00> : vector<8x128xf32>
    %24 = vector.multi_reduction <add>, %23, %cst_9 [0] : vector<8x8x128xf32> to vector<8x128xf32>
    %25 = vector.shape_cast %13 : vector<8x128xf32> to vector<8x1x128xf32>
    %26 = vector.broadcast %25 : vector<8x1x128xf32> to vector<8x8x128xf32>
    %27 = arith.mulf %23, %26 : vector<8x8x128xf32>
    %cst_10 = arith.constant dense<0.000000e+00> : vector<8x128xf32>
    %28 = vector.multi_reduction <add>, %27, %cst_10 [0] : vector<8x8x128xf32> to vector<8x128xf32>
    %29 = tpu.reciprocal %24 {approx = true} : vector<8x128xf32> -> vector<8x128xf32>
    %30 = arith.mulf %24, %29 : vector<8x128xf32>
    %cst_11 = arith.constant 2.000000e+00 : f32
    %31 = vector.broadcast %cst_11 : f32 to vector<8x128xf32>
    %32 = arith.subf %31, %30 : vector<8x128xf32>
    %33 = arith.mulf %29, %32 : vector<8x128xf32>
    %34 = arith.mulf %28, %33 : vector<8x128xf32>
    %cst_12 = arith.constant dense<0.000000e+00> : vector<8x128xf32>
    %35 = tpu.matmul %1, %34, %cst_12 {dimension_numbers = #tpu.dot_dimension_numbers<[1], [0], [0], [1], [0, 0, 1, 1], [], []>} : vector<8x8xf32>, vector<8x128xf32>, vector<8x128xf32> -> vector<8x128xf32>
    %36 = vector.broadcast %3 : vector<8x1xf32> to vector<8x128xf32>
    %37 = arith.addf %35, %36 : vector<8x128xf32>
    %c0_13 = arith.constant 0 : index
    %38 = arith.index_cast %5 : i32 to index
    %39 = vector.load %arg6[%c0_13, %38] : memref<8x128xf32, #tpu.memory_space<vmem>>, vector<8x128xf32>
    tpu.vector_store %arg6[%c0_13, %38], %37 {strides = array<i32>} : memref<8x128xf32, #tpu.memory_space<vmem>>, vector<8x128xf32>,
    %c1_i32 = arith.constant 1 : i32
    return
  }
  func.func @transform_0(%arg0: i32) -> (i32, i32) {
    %c0_i32 = arith.constant 0 : i32
    %c0_i32_0 = arith.constant 0 : i32
    return %c0_i32, %arg0 : i32, i32
  }
  func.func @transform_1(%arg0: i32) -> (i32, i32) {
    %c0_i32 = arith.constant 0 : i32
    %c0_i32_0 = arith.constant 0 : i32
    %c0_i32_1 = arith.constant 0 : i32
    return %c0_i32, %c0_i32_0 : i32, i32
  }
  func.func @transform_2(%arg0: i32) -> (i32, i32) {
    %c0_i32 = arith.constant 0 : i32
    %c0_i32_0 = arith.constant 0 : i32
    %c0_i32_1 = arith.constant 0 : i32
    return %c0_i32, %c0_i32_0 : i32, i32
  }
  func.func @transform_3(%arg0: i32) -> (i32, i32) {
    %c0_i32 = arith.constant 0 : i32
    %c0_i32_0 = arith.constant 0 : i32
    %c0_i32_1 = arith.constant 0 : i32
    return %c0_i32, %c0_i32_0 : i32, i32
  }
  func.func @transform_4(%arg0: i32) -> (i32, i32) {
    %c0_i32 = arith.constant 0 : i32
    %c0_i32_0 = arith.constant 0 : i32
    %c0_i32_1 = arith.constant 0 : i32
    return %c0_i32, %c0_i32_0 : i32, i32
  }
  func.func @transform_5(%arg0: i32) -> (i32, i32) {
    %c0_i32 = arith.constant 0 : i32
    %c0_i32_0 = arith.constant 0 : i32
    return %c0_i32, %arg0 : i32, i32
  }
}

</mosaic_0001>

<bundles_post_ra>
// kernel: tpu_custom_call.1
= control target key start
LH: loop header
LB: loop body
LE: loop exit
PB: predicated region body
PF: predicated region fallthrough
CT: control target
= control target key end

     0   :  { %vm45_vm0 = vcmask 64512   ;;  %v551_v2 = vmov 0.0   ;;  %vm552_vm1 = vmmov 0   ;;  %s665_s0 = inlined_call_operand.vmem [shape: f32[8,128], index: 0, kind: input, shape index: {}]   ;;  %s666_s1 = inlined_call_operand.vmem [shape: f32[24,8], index: 1, kind: input, shape index: {}]   ;;  %s667_s2 = inlined_call_operand.vmem [shape: f32[8,8], index: 2, kind: input, shape index: {}]   ;;  %s668_s3 = inlined_call_operand.vmem [shape: f32[24,1], index: 3, kind: input, shape index: {}]   ;;  %s669_s4 = inlined_call_operand.vmem [shape: f32[8,1], index: 4, kind: input, shape index: {}]   ;;  %s670_s5 = inlined_call_operand.hbm [shape: f32[8,128], index: 5, kind: output, shape index: {}]  }
   0x1   :  { %v29_v0 = vld [vmem:[%s665_s0] sm:$0xff]  ;;  %484 = vmatprep.subr.mxu0 %v551_v2  ;;  %486 = vmatprep.mubr.msk.f32.mxu0 %vm552_vm1, %v551_v2  ;;  %v23_v3 = vld [vmem:[%s666_s1 + $0x10] sm:$0xff] }
   0x2   :  { %v21_v1 = vld [vmem:[%s666_s1] sm:$0xff]  ;;  %485 = vmatpush3.msra.mxu0 %v29_v0  ;;  %500 = vmatprep.subr.mxu1 %v551_v2 }
   0x3   :  { %10 = vsyncpa [#allocation3], 0  ;;  %487 = vmatmul.mubr.msk.f32.vlgmr.msra.gmra.mrb[0].mxu0 %vm45_vm0, %v21_v1  ;;  %501 = vmatpush3.msra.mxu1 %v29_v0  ;;  %v26_v4 = vld [vmem:[%s668_s3 + $0x8] sm:$0xff]  ;;  %v27_v6 = vld [vmem:[%s668_s3 + $0x10] sm:$0xff]  ;;  %v553_v7 = vmov 0   ;;  %v140_v12 = vlaneseq  ;;  %s555_s7 = smov [#allocation2]  }
   0x4   :  { %489 = vmatprep.mubr.msk.f32.mxu0 %vm552_vm1, %v551_v2  ;;  %v22_v5 = vld [vmem:[%s666_s1 + $0x8] sm:$0xff]  ;;  %492 = vmatprep.mubr.msk.f32.mxu1 %vm552_vm1, %v551_v2  ;;  %v25_v8 = vld [vmem:[%s668_s3] sm:$0xff]  ;;  %v554_v10 = vmov 1966171168   ;;  %s466_s8 = sshll.u32 %s555_s7, 4  ;;  %s467_s8 = int_to_ptr.vmem [resolvable:$true] %s466_s8 }
   0x5   :  { %493 = vmatmul.mubr.msk.f32.vlgmr.msra.gmra.mrb[0].mxu1 %vm45_vm0, %v23_v3  ;;  %507 = vset.pattern.permute.xlu0 %v553_v7  ;;  %v28_v9 = vld [vmem:[%s669_s4] sm:$0xff]  ;;  %v138_v11 = vunpack.c.l.s4 %v554_v10  ;;  %v141_v14 = vshrl.u32 %v140_v12, 7  ;;  %s527_s9 = scalar_lea.vmem %s467_s8, 128  ;;  %p532_p1 = scmp.lt.s32.totalorder %s467_s8, %s467_s8 }
   0x6   :  { %37 = vperm.xlu0 %507, %v26_v4   ;;  %508 = vset.pattern.permute.xlu1 %v553_v7  ;;  %p528_p0 = scmp.ne.s32.totalorder %s467_s8, %s527_s9  ;;  %p533_p2 = scmp.lt.s32.totalorder %s527_s9, %s527_s9 }
   0x7   :  { %490 = vmatmul.mubr.msk.f32.gmra.mrb[2].mxu0 %vm45_vm0, %v22_v5  ;;  %42 = vperm.xlu1 %508, %v27_v6   ;;  %v139_v13 = vunpack.c.0.s8 %v138_v11  ;;  %v620_v26 = vsub.s32 0, %v141_v14 }
   0x8   :  { %495 = vmatprep.subr.mxu1 %v551_v2  ;;  %497 = vmatprep.mubr.msk.f32.mxu1 %vm552_vm1, %v551_v2  ;;  %p534_p3 = por %p533_p2, %p532_p1 }
   0x9   :  { %v617_v19 = vsub.s32 %v139_v13, %v141_v14 }
   0xa   :  { %32 = vperm.xlu0 %507, %v25_v8   ;;  %p535_p4 = pnand %p534_p3, %p528_p0 }
   0xb   :  { %383 = vperm.xlu1 %508, %v28_v9  }
  0x85   :  { %v38_v18 = vpop.permute.xlu0 %37 }
  0x86   :  { %v43_v48 = vpop.permute.xlu1 %42 }
  0x89   :  { %v33_v27 = vpop.permute.xlu0 %32 }
  0xd6   :  { %v121_v15 = vpop.f32.mrb[0].mxu0 }
  0xd7   :  { %v488_v16 = vpop.f32.mrb[1].mxu0  ;;  %v122_v35 = vadd.f32 %v121_v15, %v33_v27 }
  0xd8   :  { %v131_v17 = vpop.f32.mrb[0].mxu1 }
  0xd9   :  { %v494_v20 = vpop.f32.mrb[1].mxu1  ;;  %v132_v57 = vadd.f32 %v131_v17, %v43_v48 }
  0xda   :  { %v126_v21 = vpop.f32.mrb[2].mxu0 }
  0xdb   :  { %v127_v22 = vadd.f32 %v126_v21, %v38_v18  ;;  %v491_v23 = vpop.f32.mrb[3].mxu0  ;;  %v272_v63 = vcombine.high %v132_v57, %v132_v57  ;;  %v279_v2 = vrot.slane %v132_v57, %v617_v19 }
  0xdd   :  { %v136_v24 = vcombine.high %v127_v22, %v127_v22  ;;  %v143_v25 = vrot.slane %v127_v22, %v617_v19  ;;  %v286_v3 = vrot.slane %v272_v63, %v617_v19  ;;  %v287_v15 = vcombine.high %v279_v2, %v279_v2 }
  0xde   :  { %v295_v20 = vrot.slane %v279_v2, %v617_v19 }
  0xdf   :  { %v150_v28 = vrot.slane %v136_v24, %v617_v19  ;;  %v151_v29 = vcombine.high %v143_v25, %v143_v25  ;;  %v159_v30 = vrot.slane %v143_v25, %v617_v19  ;;  %v288_v22 = vcombine.high %v286_v3, %v286_v3 }
  0xe0   :  { %v309_v23 = vrot.slane %v287_v15, %v617_v19  ;;  %v302_v25 = vrot.slane %v286_v3, %v617_v19  ;;  %v317_v27 = vcombine.high %v295_v20, %v295_v20 }
  0xe1   :  { %v152_v31 = vcombine.high %v150_v28, %v150_v28  ;;  %v166_v32 = vrot.slane %v150_v28, %v617_v19  ;;  %v173_v33 = vrot.slane %v151_v29, %v617_v19  ;;  %v181_v34 = vcombine.high %v159_v30, %v159_v30 }
  0xe2   :  { %v188_v36 = vrot.slane %v159_v30, %v620_v26  ;;  %v316_v28 = vrot.slane %v288_v22, %v617_v19  ;;  %v319_v29 = vcombine.high %v309_v23, %v309_v23  ;;  %v324_v30 = vrot.slane %v295_v20, %v620_v26 }
  0xe3   :  { %v180_v37 = vrot.slane %v152_v31, %v617_v19  ;;  %v182_v38 = vcombine.high %v166_v32, %v166_v32  ;;  %v183_v39 = vcombine.high %v173_v33, %v173_v33  ;;  %v192_v40 = vrot.slane %v173_v33, %v620_v26 }
  0xe4   :  { %v196_v41 = vrot.slane %v181_v34, %v620_v26  ;;  %v204_v42 = vrot.slane %v166_v32, %v620_v26  ;;  %v225_v43 = vmul.f32 %v188_v36, %v122_v35  ;;  %v328_v31 = vrot.slane %v309_v23, %v620_v26 }
  0xe5   :  { %v184_v44 = vcombine.high %v180_v37, %v180_v37  ;;  %v200_v45 = vrot.slane %v183_v39, %v620_v26  ;;  %v208_v46 = vrot.slane %v180_v37, %v620_v26  ;;  %v212_v47 = vrot.slane %v182_v38, %v620_v26 }
  0xe6   :  { %v226_v49 = vmul.f32 %v192_v40, %v122_v35  ;;  %v227_v50 = vmul.f32 %v196_v41, %v122_v35  ;;  %v229_v51 = vmul.f32 %v204_v42, %v122_v35  ;;  %v318_v32 = vcombine.high %v302_v25, %v302_v25 }
  0xe7   :  { %v216_v52 = vrot.slane %v184_v44, %v620_v26  ;;  %v228_v53 = vmul.f32 %v200_v45, %v122_v35  ;;  %v230_v54 = vmul.f32 %v208_v46, %v122_v35  ;;  %v231_v55 = vmul.f32 %v212_v47, %v122_v35 }
  0xe8   :  { %v233_v56 = vmax.f32 %v225_v43, %v229_v51  ;;  %v332_v33 = vrot.slane %v317_v27, %v620_v26  ;;  %v336_v36 = vrot.slane %v319_v29, %v620_v26  ;;  %v340_v38 = vrot.slane %v302_v25, %v620_v26 }
  0xe9   :  { %v232_v58 = vmul.f32 %v216_v52, %v122_v35  ;;  %v234_v59 = vmax.f32 %v226_v49, %v230_v54  ;;  %v235_v60 = vmax.f32 %v227_v50, %v231_v55  ;;  %v320_v35 = vcombine.high %v316_v28, %v316_v28 }
  0xea   :  { %v344_v19 = vrot.slane %v316_v28, %v620_v26  ;;  %v348_v44 = vrot.slane %v318_v32, %v620_v26 }
  0xeb   :  { %v236_v61 = vmax.f32 %v228_v53, %v232_v58  ;;  %v237_v62 = vmax.f32 %v233_v56, %v234_v59  ;;  %v352_v47 = vrot.slane %v320_v35, %v620_v26 }
  0xed   :  { %v238_v0 = vmax.f32 %v235_v60, %v236_v61 }
  0xef   :  { %v239_v1 = vmax.f32 %v237_v62, %v238_v0 }
  0xf1   :  { %v240_v4 = vsub.f32 %v225_v43, %v239_v1  ;;  %v241_v5 = vsub.f32 %v226_v49, %v239_v1  ;;  %v242_v6 = vsub.f32 %v227_v50, %v239_v1  ;;  %v243_v7 = vsub.f32 %v228_v53, %v239_v1 }
  0xf2   :  { %v244_v8 = vsub.f32 %v229_v51, %v239_v1  ;;  %v245_v9 = vsub.f32 %v230_v54, %v239_v1  ;;  %v246_v10 = vsub.f32 %v231_v55, %v239_v1  ;;  %v247_v11 = vsub.f32 %v232_v58, %v239_v1 }
  0xf3   :  { %v248_v12 = vmul.f32 1.442695, %v240_v4  ;;  %v250_v13 = vmul.f32 1.442695, %v241_v5  ;;  %v252_v14 = vmul.f32 1.442695, %v242_v6 }
  0xf4   :  { %v254_v16 = vmul.f32 1.442695, %v243_v7  ;;  %v256_v17 = vmul.f32 1.442695, %v244_v8  ;;  %v258_v18 = vmul.f32 1.442695, %v245_v9 }
  0xf5   :  { %509 = vpow2.f32 %v248_v12  ;;  %v260_v21 = vmul.f32 1.442695, %v246_v10  ;;  %v262_v24 = vmul.f32 1.442695, %v247_v11  ;;  %v24_v9 = vld [vmem:[%s667_s2] sm:$0xff]  ;;  %v384_v10 = vpop.permute.xlu1 %383 }
  0xf6   :  { %511 = vpow2.f32 %v250_v13 }
  0xf7   :  { %513 = vpow2.f32 %v252_v14 }
  0xf8   :  { %515 = vpow2.f32 %v254_v16 }
  0xf9   :  { %517 = vpow2.f32 %v256_v17 }
  0xfa   :  { %519 = vpow2.f32 %v258_v18 }
  0xfb   :  { %521 = vpow2.f32 %v260_v21 }
  0xfc   :  { %523 = vpow2.f32 %v262_v24 }
  0xff   :  { %v510_v34 = vpop.eup %509 }
 0x100   :  { %v512_v37 = vpop.eup %511  ;;  %v361_v39 = vmul.f32 %v510_v34, %v324_v30 }
 0x101   :  { %v514_v40 = vpop.eup %513  ;;  %v264_v41 = vadd.f32 %v512_v37, %v510_v34  ;;  %v362_v42 = vmul.f32 %v512_v37, %v328_v31 }
 0x102   :  { %v516_v43 = vpop.eup %515  ;;  %v363_v45 = vmul.f32 %v514_v40, %v332_v33 }
 0x103   :  { %v518_v46 = vpop.eup %517  ;;  %v364_v48 = vmul.f32 %v516_v43, %v336_v36  ;;  %v369_v49 = vadd.f32 %v362_v42, %v361_v39  ;;  %v265_v50 = vadd.f32 %v514_v40, %v264_v41 }
 0x104   :  { %v520_v51 = vpop.eup %519  ;;  %v365_v52 = vmul.f32 %v518_v46, %v340_v38 }
 0x105   :  { %v522_v53 = vpop.eup %521  ;;  %v366_v54 = vmul.f32 %v520_v51, %v344_v19  ;;  %v370_v55 = vadd.f32 %v369_v49, %v363_v45  ;;  %v266_v56 = vadd.f32 %v516_v43, %v265_v50 }
 0x106   :  { %v524_v57 = vpop.eup %523  ;;  %v367_v58 = vmul.f32 %v522_v53, %v348_v44 }
 0x107   :  { %v371_v59 = vadd.f32 %v370_v55, %v364_v48  ;;  %v267_v60 = vadd.f32 %v518_v46, %v266_v56  ;;  %v368_v61 = vmul.f32 %v524_v57, %v352_v47 }
 0x109   :  { %v372_v62 = vadd.f32 %v371_v59, %v365_v52  ;;  %v268_v63 = vadd.f32 %v520_v51, %v267_v60 }
 0x10b   :  { %v269_v0 = vadd.f32 %v522_v53, %v268_v63  ;;  %v373_v1 = vadd.f32 %v372_v62, %v366_v54 }
 0x10d   :  { %v270_v2 = vadd.f32 %v524_v57, %v269_v0  ;;  %v374_v26 = vadd.f32 %v373_v1, %v367_v58 }
 0x10f   :  { %v375_v3 = vadd.f32 %v374_v26, %v368_v61  ;;  %525 = vrcp.f32 %v270_v2 }
 0x119   :  { %v526_v4 = vpop.eup %525 }
 0x11a   :  { %v377_v5 = vmul.f32 %v526_v4, %v270_v2 }
 0x11c   :  { %v378_v6 = vsub.f32 2.0, %v377_v5 }
 0x11e   :  { %v379_v7 = vmul.f32 %v526_v4, %v378_v6 }
 0x120   :  { %v380_v8 = vmul.f32 %v379_v7, %v375_v3 }
 0x122   :  { %496 = vmatpush3.msra.mxu1 %v380_v8 }
 0x123   :  { %498 = vmatmul.mubr.msk.f32.vlgmr.msra.gmra.mrb[2].mxu1 %vm45_vm0, %v24_v9 }
 0x1f6   :  { %v455_v11 = vpop.f32.mrb[2].mxu1 }
 0x1f7   :  { %v456_v12 = vadd.f32 %v455_v11, %v384_v10  ;;  %v499_v13 = vpop.f32.mrb[3].mxu1 }
 0x1f9   :  { %459 = vst [vmem:[#allocation2] sm:$0xff] %v456_v12 }
 0x1fa   :  { %538 = shalt.err (!%p535_p4)
}
 0x1fb   :  { %s539_s11 = scalar_lea.hbm %s670_s5, 128 }
 0x1fc   :  { %p540_p5 = scmp.ne.s32.totalorder %s670_s5, %s539_s11  ;;  %p543_p6 = scmp.lt.u32.totalorder %s539_s11, %s670_s5 }
 0x1fe   :  { %p545_p7 = pnand %p543_p6, %p540_p5 }
 0x200   :  { %548 = shalt.err (!%p545_p7)
}
 0x201   :  { %469 = dma.vmem_to_hbm [thread:$0]  %s467_s8, 128, %s670_s5, [#allocation3]  }
 0x202   :  { %549 = dma.done.wait [#allocation3], 128  }
 0x203   :  { %550 = vsyncadd [#allocation3], 4294967168 }
 0x204   :  { %473 = vsyncpa [#allocation3], 1 }

</bundles_post_ra>
